<compile_context>
chip_gen: v5e
topology: v5e:2x2
jax: 0.10.0
libtpu: 0.0.40
codegen_flags: <defaults>
</compile_context>

<pallas_src>
import functools
import math

import jax
import jax.numpy as jnp
from jax.experimental import pallas as pl
from jax.experimental.pallas import tpu as pltpu


# ----------------------------------------------------------------------------
# helpers
# ----------------------------------------------------------------------------
_LANE = 128            # lane width
_TP_MAX = 2048         # lane-axis tile cap (bigger tiles, fewer grid steps)
_TG_MAX = 256          # sublane-axis tile cap
_K_SINGLE_MAX = 2048   # K <= this -> single K block (no scratch, no K padding)

_VMEM_LIMIT_CACHE = None


def _round_up(x, m):
    return ((x + m - 1) // m) * m


def _lcm(a, b):
    return a * b // math.gcd(a, b)


def _vmem_limit_bytes():
    """Scoped-VMEM budget derived from the actual chip (v7x has 64 MiB/TC)."""
    global _VMEM_LIMIT_CACHE
    if _VMEM_LIMIT_CACHE is None:
        try:
            cap = int(pltpu.get_tpu_info().vmem_capacity_bytes)
        except Exception:
            cap = 64 * 1024 * 1024          # conservative (v7x) fallback
        _VMEM_LIMIT_CACHE = min(96 * 1024 * 1024, (cap * 3) // 4)
    return _VMEM_LIMIT_CACHE


def _compiler_params(dim_sems):
    return pltpu.CompilerParams(
        dimension_semantics=dim_sems, vmem_limit_bytes=_vmem_limit_bytes()
    )


# ----------------------------------------------------------------------------
# Pallas GEMM with fused epilogue (bias [+ InstanceNorm (+ReLU / +residual)]
# or sigmoid).  out[G, P] = epilogue(w[G, K] @ x[K, P] + b[G, 1])
# G = output channels (sublanes), P = N*Ho*Wo pixels (lanes) -> lane-dense
# stores regardless of channel count.
# ----------------------------------------------------------------------------
def _apply_epilogue(acc, bias, res, *, post, hw, eps=1e-5):
    """acc: (tg, tp) f32; bias: (tg, 1) f32; res: (tg, tp) or None."""
    y = acc + bias
    if post is None:
        return y
    if post == "sigmoid":
        return jax.nn.sigmoid(y)
    # InstanceNorm over segments of `hw` consecutive pixels (one instance each;
    # the planner guarantees tp % hw == 0, so segments never cross tiles).
    tg, tp = y.shape
    ni = tp // hw
    inv_hw = 1.0 / hw
    if ni == 1:
        mean = jnp.sum(y, axis=-1, keepdims=True) * inv_hw
        var = jnp.maximum(jnp.sum(y * y, axis=-1, keepdims=True) * inv_hw
                          - mean * mean, 0.0)
        y = (y - mean) * jax.lax.rsqrt(var + eps)
    else:
        col = jax.lax.broadcasted_iota(jnp.int32, (tg, tp), 1) // hw
        out = jnp.zeros_like(y)
        for i in range(ni):                       # ni is small & static
            m = col == i
            ym = jnp.where(m, y, 0.0)
            mean = jnp.sum(ym, axis=-1, keepdims=True) * inv_hw
            var = jnp.maximum(jnp.sum(ym * ym, axis=-1, keepdims=True) * inv_hw
                              - mean * mean, 0.0)
            out = jnp.where(m, (y - mean) * jax.lax.rsqrt(var + eps), out)
        y = out
    if post == "in_relu":
        y = jnp.maximum(y, 0.0)
    else:  # "in_res": out = residual + IN(conv(x))   (no ReLU)
        y = y + res.astype(jnp.float32)
    return y


def _gemm_single_k_kernel(*refs, post, hw):
    """K fits one block: dot -> epilogue -> store (no accumulator scratch)."""
    if post == "in_res":
        w_ref, x_ref, b_ref, res_ref, o_ref = refs
        res = res_ref[...]
    else:
        w_ref, x_ref, b_ref, o_ref = refs
        res = None
    acc = jnp.dot(w_ref[...], x_ref[...], preferred_element_type=jnp.float32)
    o_ref[...] = _apply_epilogue(acc, b_ref[...], res, post=post,
                                 hw=hw).astype(o_ref.dtype)


def _gemm_multi_k_kernel(*refs, post, hw):
    if post == "in_res":
        w_ref, x_ref, b_ref, res_ref, o_ref, acc_ref = refs
    else:
        w_ref, x_ref, b_ref, o_ref, acc_ref = refs
        res_ref = None
    k = pl.program_id(2)
    part = jnp.dot(w_ref[...], x_ref[...], preferred_element_type=jnp.float32)

    @pl.when(k == 0)
    def _():
        acc_ref[...] = part

    @pl.when(k != 0)
    def _():
        acc_ref[...] += part

    @pl.when(k == pl.num_programs(2) - 1)
    def _():
        res = res_ref[...] if res_ref is not None else None
        o_ref[...] = _apply_epilogue(acc_ref[...], b_ref[...], res, post=post,
                                     hw=hw).astype(o_ref.dtype)


def _plan_tiles(G, K, P, hw, k_block_max):
    """Pick (tg, tk, tp, Kp) tiles.  No G/P padding ever; K padded only when it
    must be split.  Guarantees >=2 parallel blocks when the layer allows it."""
    # --- K ---
    if K <= k_block_max:
        tk, Kp = K, K
    else:
        best = None
        for c in (2048, 1024, 512, 256, 128):
            if c > k_block_max:
                continue
            pad = _round_up(K, c)
            if best is None or pad < best[1] or (pad == best[1] and c > best[0]):
                best = (c, pad)
        tk, Kp = best
    # --- P (lane axis): tiles must be x128 and, when an IN epilogue is fused,
    #     contain whole instances (x hw). ---
    p_align = _LANE if hw is None else _lcm(_LANE, hw)
    if P % p_align == 0:
        tp = p_align
        while tp * 2 <= _TP_MAX and P % (tp * 2) == 0:
            tp *= 2
    else:
        tp = P                      # single full block (exempt from lane rule)
    # --- G (sublane axis) ---
    if G <= _TG_MAX:
        tg = G
    elif G % _TG_MAX == 0:
        tg = _TG_MAX
    else:
        tg = G
    # --- keep both v7x TensorCores busy: >=2 blocks on the parallel axes ---
    if (G // tg) * (P // tp) == 1:
        if tp % (2 * p_align) == 0:
            tp //= 2
        elif tg % 32 == 0:          # keep bf16-friendly sublane multiples
            tg //= 2
    return tg, tk, tp, Kp


def gemm(w, x, b, *, post=None, hw=None, residual=None,
         out_dtype=jnp.bfloat16, k_block_max=_K_SINGLE_MAX):
    """w: [G, K] bf16, x: [K, P] bf16, b: [G, 1] f32, residual: [G, P] or None."""
    G, K = w.shape
    Kx, P = x.shape
    assert K == Kx
    assert (residual is not None) == (post == "in_res")
    fuse_in = post in ("in_relu", "in_res")
    if fuse_in:
        assert hw is not None and P % hw == 0
    tg, tk, tp, Kp = _plan_tiles(G, K, P, hw if fuse_in else None, k_block_max)
    if fuse_in:
        assert tp % hw == 0
    if Kp != K:                      # only on the (rare) multi-K path
        w = jnp.pad(w, ((0, 0), (0, Kp - K)))
        x = jnp.pad(x, ((0, Kp - K), (0, 0)))
    gi, gj = G // tg, P // tp
    args = [w, x, b] + ([residual] if residual is not None else [])

    if Kp == tk:
        # single K block: no accumulator scratch, epilogue fused with the dot.
        in_specs = [
            pl.BlockSpec((tg, Kp), lambda i, j: (i, 0)),
            pl.BlockSpec((Kp, tp), lambda i, j: (0, j)),
            pl.BlockSpec((tg, 1), lambda i, j: (i, 0)),
        ]
        if residual is not None:
            in_specs.append(pl.BlockSpec((tg, tp), lambda i, j: (i, j)))
        return pl.pallas_call(
            functools.partial(_gemm_single_k_kernel, post=post, hw=hw),
            out_shape=jax.ShapeDtypeStruct((G, P), out_dtype),
            grid=(gi, gj),
            in_specs=in_specs,
            out_specs=pl.BlockSpec((tg, tp), lambda i, j: (i, j)),
            compiler_params=_compiler_params(("parallel", "parallel")),
        )(*args)

    nk = Kp // tk
    in_specs = [
        pl.BlockSpec((tg, tk), lambda i, j, k: (i, k)),
        pl.BlockSpec((tk, tp), lambda i, j, k: (k, j)),
        pl.BlockSpec((tg, 1), lambda i, j, k: (i, 0)),
    ]
    if residual is not None:
        in_specs.append(pl.BlockSpec((tg, tp), lambda i, j, k: (i, j)))
    return pl.pallas_call(
        functools.partial(_gemm_multi_k_kernel, post=post, hw=hw),
        out_shape=jax.ShapeDtypeStruct((G, P), out_dtype),
        grid=(gi, gj, nk),
        in_specs=in_specs,
        out_specs=pl.BlockSpec((tg, tp), lambda i, j, k: (i, j)),
        scratch_shapes=[pltpu.VMEM((tg, tp), jnp.float32)],
        compiler_params=_compiler_params(("parallel", "parallel", "arbitrary")),
    )(*args)


# ----------------------------------------------------------------------------
# Standalone InstanceNorm (+ReLU) -- only needed after the conv-transposes.
# ----------------------------------------------------------------------------
def _in_kernel(x_ref, o_ref, *, relu, eps):
    x = x_ref[...].astype(jnp.float32)
    inv = 1.0 / x.shape[-1]
    mean = jnp.sum(x, axis=-1, keepdims=True) * inv
    var = jnp.maximum(jnp.sum(x * x, axis=-1, keepdims=True) * inv
                      - mean * mean, 0.0)
    y = (x - mean) * jax.lax.rsqrt(var + eps)
    if relu:
        y = jnp.maximum(y, 0.0)
    o_ref[...] = y.astype(o_ref.dtype)


def _row_tile(R, HW, dtype):
    sub = 16 if jnp.dtype(dtype).itemsize < 4 else 8
    if R % sub != 0:
        return R
    tr = sub
    # grow while it divides R, leaves >=2 blocks (v7x), and stays modest.
    while R % (tr * 2) == 0 and R // (tr * 2) >= 2 and (tr * 2) * HW * 8 <= (4 << 20):
        tr *= 2
    return tr


def instance_norm(x, relu=False, eps=1e-5, out_dtype=jnp.bfloat16):
    """InstanceNorm2d(affine=False) (+ReLU) on CNHW activations."""
    C, N, H, W = x.shape
    R, HW = C * N, H * W
    xr = x.reshape(R, HW)
    tr = _row_tile(R, HW, x.dtype)
    spec = pl.BlockSpec((tr, HW), lambda i: (i, 0))
    out = pl.pallas_call(
        functools.partial(_in_kernel, relu=relu, eps=eps),
        out_shape=jax.ShapeDtypeStruct((R, HW), out_dtype),
        grid=(R // tr,),
        in_specs=[spec],
        out_specs=spec,
        compiler_params=_compiler_params(("parallel",)),
    )(xr)
    return out.reshape(C, N, H, W)


# ----------------------------------------------------------------------------
# Input masking (also emits the concatenated bf16 CNHW network input).
# ----------------------------------------------------------------------------
def _mask_kernel(img_ref, edge_ref, mask_ref, im_ref, em_ref, x0_ref):
    ci = img_ref.shape[1]
    m = mask_ref[...]                       # (1, 1, HW) f32
    keep = 1.0 - m
    im = img_ref[...] * keep + m            # (1, ci, HW)
    em = edge_ref[...] * keep               # (1, 1, HW)
    im_ref[...] = im
    em_ref[...] = em
    dt = x0_ref.dtype
    x0_ref[0:ci, :] = im[0].astype(dt)
    x0_ref[ci:ci + 1, :] = em[0].astype(dt)
    x0_ref[ci + 1:ci + 2, :] = m[0].astype(dt)


def mask_inputs(images, edges, masks):
    N, Ci, H, W = images.shape
    HW = H * W
    Cx = Ci + 2
    im_m, ed_m, x0 = pl.pallas_call(
        _mask_kernel,
        out_shape=(
            jax.ShapeDtypeStruct((N, Ci, HW), jnp.float32),
            jax.ShapeDtypeStruct((N, 1, HW), jnp.float32),
            jax.ShapeDtypeStruct((Cx, N * HW), jnp.bfloat16),
        ),
        grid=(N,),
        in_specs=[
            pl.BlockSpec((1, Ci, HW), lambda n: (n, 0, 0)),
            pl.BlockSpec((1, 1, HW), lambda n: (n, 0, 0)),
            pl.BlockSpec((1, 1, HW), lambda n: (n, 0, 0)),
        ],
        out_specs=(
            pl.BlockSpec((1, Ci, HW), lambda n: (n, 0, 0)),
            pl.BlockSpec((1, 1, HW), lambda n: (n, 0, 0)),
            pl.BlockSpec((Cx, HW), lambda n: (0, n)),
        ),
        compiler_params=_compiler_params(("parallel",)),
    )(images.reshape(N, Ci, HW), edges.reshape(N, 1, HW), masks.reshape(N, 1, HW))
    return (im_m.reshape(N, Ci, H, W), ed_m.reshape(N, 1, H, W),
            x0.reshape(Cx, N, H, W))


# ----------------------------------------------------------------------------
# Conv glue on CNHW activations (im2col is indexing glue; MACs + epilogue run
# in the Pallas GEMM).
# ----------------------------------------------------------------------------
def conv2d(x, wmat, bias, *, kh, kw, stride=1, dilation=1, padding=0,
           pad_mode="zero", post=None, residual=None, out_dtype=jnp.bfloat16):
    """x: [Cin, N, H, W]; wmat: [Cout, Cin*kh*kw] bf16; bias: [Cout, 1] f32."""
    Cout = wmat.shape[0]
    Cin = x.shape[0]
    x = x.astype(jnp.bfloat16)
    if padding > 0:
        mode = "reflect" if pad_mode == "reflect" else "constant"
        x = jnp.pad(x, ((0, 0), (0, 0), (padding, padding), (padding, padding)),
                    mode=mode)
    _, N, H, W = x.shape
    Ho = (H - dilation * (kh - 1) - 1) // stride + 1
    Wo = (W - dilation * (kw - 1) - 1) // stride + 1
    # TODO(synk): fold this tap expansion into the GEMM (halo DMA) instead of
    # materializing the kh*kw-times larger im2col operand in HBM.
    cols = []
    for i in range(kh):
        for j in range(kw):
            hi, wj = i * dilation, j * dilation
            cols.append(x[:, :, hi:hi + stride * (Ho - 1) + 1:stride,
                             wj:wj + stride * (Wo - 1) + 1:stride])
    col = jnp.stack(cols, axis=1).reshape(Cin * kh * kw, N * Ho * Wo)
    res2 = residual.reshape(Cout, N * Ho * Wo) if residual is not None else None
    out = gemm(wmat, col, bias, post=post, hw=Ho * Wo,
               residual=res2, out_dtype=out_dtype)
    return out.reshape(Cout, N, Ho, Wo)


def conv_transpose2d(x, wmat, bias, out_dtype=jnp.bfloat16):
    """ConvTranspose2d(k=4, s=2, p=1) as ONE merged sub-pixel GEMM + interleave.

    x: [Cin, N, H, W]; wmat: [4*Cout, Cin*9]; bias: [4*Cout, 1].
    Returns [Cout, N, 2H, 2W].
    """
    Cin, N, H, W = x.shape
    Cout = wmat.shape[0] // 4
    xp = jnp.pad(x.astype(jnp.bfloat16), ((0, 0), (0, 0), (1, 1), (1, 1)))
    cols = []
    for u in range(3):
        for v in range(3):
            cols.append(xp[:, :, u:u + H, v:v + W])
    col = jnp.stack(cols, axis=1).reshape(Cin * 9, N * H * W)
    out = gemm(wmat, col, bias, post=None, out_dtype=out_dtype)  # [4*Cout, N*H*W]
    out = out.reshape(2, 2, Cout, N, H, W)
    # parity interleave in a single unit-stride pass (no strided scatters)
    out = jnp.transpose(out, (2, 3, 4, 0, 5, 1)).reshape(Cout, N, 2 * H, 2 * W)
    return out


# ----------------------------------------------------------------------------
# Parameters (torch layouts) + one-time conversion to GEMM-ready operands.
# ----------------------------------------------------------------------------
def _init_conv(key, cout, cin, kh, kw, scale=0.05):
    k1, k2 = jax.random.split(key)
    w = jax.random.normal(k1, (cout, cin, kh, kw), jnp.float32) * scale
    b = jax.random.normal(k2, (cout,), jnp.float32) * scale
    return w, b


def _init_convT(key, cin, cout, kh, kw, scale=0.05):
    k1, k2 = jax.random.split(key)
    w = jax.random.normal(k1, (cin, cout, kh, kw), jnp.float32) * scale
    b = jax.random.normal(k2, (cout,), jnp.float32) * scale
    return w, b


def init_params(key, dim=8, input_channel=5, n_blocks=8):
    params = {}
    keys = iter(jax.random.split(key, 64))
    ch = dim
    params["e1_w"], params["e1_b"] = _init_conv(next(keys), ch, input_channel, 7, 7)
    params["e2_w"], params["e2_b"] = _init_conv(next(keys), 2 * ch, ch, 4, 4)
    params["e3_w"], params["e3_b"] = _init_conv(next(keys), 4 * ch, 2 * ch, 4, 4)
    mid = 4 * ch
    for i in range(n_blocks):
        params[f"m{i}_w1"], params[f"m{i}_b1"] = _init_conv(next(keys), mid, mid, 3, 3)
        params[f"m{i}_w2"], params[f"m{i}_b2"] = _init_conv(next(keys), mid, mid, 3, 3)
    params["d1_w"], params["d1_b"] = _init_convT(next(keys), mid, mid // 2, 4, 4)
    params["d2_w"], params["d2_b"] = _init_convT(next(keys), mid // 2, mid // 4, 4, 4)
    params["d3_w"], params["d3_b"] = _init_conv(next(keys), 1, mid // 4, 7, 7)
    return params


def _prep_conv(w, bias):
    cout = w.shape[0]
    return (w.reshape(cout, -1).astype(jnp.bfloat16),
            bias.reshape(cout, 1).astype(jnp.float32))


def _prep_convT(w_t, bias):
    """Merge the 4 sub-pixel parity kernels of ConvTranspose2d(4,s=2,p=1) into
    one [4*Cout, Cin*9] weight over a shared 3x3-shift im2col."""
    Cin, Cout = w_t.shape[0], w_t.shape[1]
    tap = ((3, 1), (2, 0))           # kernel taps used by output parity 0 / 1
    wm = jnp.zeros((4 * Cout, Cin, 3, 3), jnp.float32)
    for r in (0, 1):
        for c in (0, 1):
            p = 2 * r + c
            for a in (0, 1):
                for d in (0, 1):
                    u, v = r + a, c + d
                    coef = jnp.transpose(w_t[:, :, tap[r][a], tap[c][d]])  # [Cout,Cin]
                    wm = wm.at[p * Cout:(p + 1) * Cout, :, u, v].set(coef)
    wmat = wm.reshape(4 * Cout, Cin * 9).astype(jnp.bfloat16)
    bm = jnp.tile(bias, 4).reshape(4 * Cout, 1).astype(jnp.float32)
    return wmat, bm


def prepare_params(params, n_blocks=8):
    """One-time conversion (outside the per-forward trace): reshape / parity
    merge / dtype cast of every weight into its GEMM-ready form."""
    p = {}
    for k in ("e1", "e2", "e3", "d3"):
        p[k + "_w"], p[k + "_b"] = _prep_conv(params[k + "_w"], params[k + "_b"])
    for i in range(n_blocks):
        for s in ("1", "2"):
            p[f"m{i}_w{s}"], p[f"m{i}_b{s}"] = _prep_conv(
                params[f"m{i}_w{s}"], params[f"m{i}_b{s}"])
    for k in ("d1", "d2"):
        p[k + "_w"], p[k + "_b"] = _prep_convT(params[k + "_w"], params[k + "_b"])
    return p


# ----------------------------------------------------------------------------
# ECModelStage1.forward
# ----------------------------------------------------------------------------
def ec_stage1_forward(prepared, images, edges, masks, n_blocks=8):
    p = prepared
    # input masking + concat + CNHW/bf16 conversion in one Pallas pass
    images_masked, edges_masked, x = mask_inputs(images, edges, masks)

    # --- encoder (bias + IN + ReLU fused into each GEMM epilogue) ---
    x = conv2d(x, p["e1_w"], p["e1_b"], kh=7, kw=7, padding=3,
               pad_mode="reflect", post="in_relu")
    x = conv2d(x, p["e2_w"], p["e2_b"], kh=4, kw=4, stride=2, padding=1,
               post="in_relu")
    # f32 out: start of the residual carry chain (kept f32 across the blocks)
    x = conv2d(x, p["e3_w"], p["e3_b"], kh=4, kw=4, stride=2, padding=1,
               post="in_relu", out_dtype=jnp.float32)

    # --- middle: 8 dilated resnet blocks, out = x + IN(conv(ReLU(IN(conv(x))))) ---
    for i in range(n_blocks):
        res = x
        h = conv2d(x, p[f"m{i}_w1"], p[f"m{i}_b1"], kh=3, kw=3, dilation=2,
                   padding=2, pad_mode="reflect", post="in_relu")
        x = conv2d(h, p[f"m{i}_w2"], p[f"m{i}_b2"], kh=3, kw=3, padding=1,
                   pad_mode="reflect", post="in_res", residual=res,
                   out_dtype=jnp.float32)

    # --- decoder ---
    x = conv_transpose2d(x, p["d1_w"], p["d1_b"])
    x = instance_norm(x, relu=True)
    x = conv_transpose2d(x, p["d2_w"], p["d2_b"])
    x = instance_norm(x, relu=True)
    x = conv2d(x, p["d3_w"], p["d3_b"], kh=7, kw=7, padding=3,
               pad_mode="reflect", post="sigmoid", out_dtype=jnp.float32)

    edge_out = jnp.transpose(x, (1, 0, 2, 3))            # back to NCHW [N,1,H,W]
    return {
        "edge_out": edge_out,
        "images_masked": images_masked,
        "edges_masked": edges_masked,
    }


# TODO(synk): ECModelStage1.process (discriminator, adversarial/L1 losses, Adam
# steps, LR schedules) is training machinery, not a forward pass -- not translated.

if __name__ == "__main__":
    N, H, W = 2, 16, 16
    dim = 8

    key = jax.random.PRNGKey(0)
    k_img, k_edge, k_mask, k_param, k_chk = jax.random.split(key, 5)

    images = jax.random.uniform(k_img, (N, 3, H, W), jnp.float32)
    edges = jax.random.uniform(k_edge, (N, 1, H, W), jnp.float32)
    masks = (jax.random.uniform(k_mask, (N, 1, H, W)) > 0.5).astype(jnp.float32)

    params = init_params(k_param, dim=dim, input_channel=5)
    prepared = prepare_params(params)   # one-time GEMM-ready conversion

    # --- numerical self-checks against XLA references -----------------------
    kc = jax.random.split(k_chk, 8)

    # (1) multi-K GEMM path (forced K tiling) vs. jnp reference
    wg = (jax.random.normal(kc[5], (64, 384), jnp.float32) * 0.1).astype(jnp.bfloat16)
    xg = jax.random.normal(kc[6], (384, 256), jnp.float32).astype(jnp.bfloat16)
    bg = jax.random.normal(kc[7], (64, 1), jnp.float32) * 0.1
    got_g = gemm(wg, xg, bg, post=None, out_dtype=jnp.float32, k_block_max=128)
    ref_g = jnp.dot(wg.astype(jnp.float32), xg.astype(jnp.float32),
                    precision=jax.lax.Precision.HIGHEST) + bg
    assert float(jnp.max(jnp.abs(got_g - ref_g))) < 1e-2, "multi-K GEMM mismatch"

    # (2) strided conv vs. XLA reference
    xc = jax.random.normal(kc[0], (2, 8, 10, 10), jnp.float32)           # NCHW
    wc = jax.random.normal(kc[1], (6, 8, 4, 4), jnp.float32) * 0.05
    bc = jax.random.normal(kc[2], (6,), jnp.float32) * 0.05
    ref = jax.lax.conv_general_dilated(
        xc, wc, window_strides=(2, 2), padding=((1, 1), (1, 1)),
        dimension_numbers=("NCHW", "OIHW", "NCHW"),
        precision=jax.lax.Precision.HIGHEST) + bc[None, :, None, None]
    wcm, bcm = _prep_conv(wc, bc)
    got = jnp.transpose(
        conv2d(jnp.transpose(xc, (1, 0, 2, 3)), wcm, bcm, kh=4, kw=4,
               stride=2, padding=1, out_dtype=jnp.float32), (1, 0, 2, 3))
    assert float(jnp.max(jnp.abs(got - ref))) < 5e-2, "conv2d mismatch"

    # (3) merged sub-pixel conv-transpose vs. XLA reference
    wt = jax.random.normal(kc[3], (8, 4, 4, 4), jnp.float32) * 0.05      # [Cin,Cout,4,4]
    bt = jax.random.normal(kc[4], (4,), jnp.float32) * 0.05
    ref_t = jax.lax.conv_general_dilated(
        xc, jnp.transpose(jnp.flip(wt, (2, 3)), (1, 0, 2, 3)),
        window_strides=(1, 1), padding=((2, 2), (2, 2)), lhs_dilation=(2, 2),
        dimension_numbers=("NCHW", "OIHW", "NCHW"),
        precision=jax.lax.Precision.HIGHEST) + bt[None, :, None, None]
    wtm, btm = _prep_convT(wt, bt)
    got_t = jnp.transpose(
        conv_transpose2d(jnp.transpose(xc, (1, 0, 2, 3)), wtm, btm,
                         out_dtype=jnp.float32), (1, 0, 2, 3))
    assert float(jnp.max(jnp.abs(got_t - ref_t))) < 5e-2, "conv_transpose2d mismatch"

    # --- full forward --------------------------------------------------------
    fwd = jax.jit(functools.partial(ec_stage1_forward, n_blocks=8))
    out = fwd(prepared, images, edges, masks)
    out = jax.block_until_ready(out)

    eo = out["edge_out"]
    assert eo.shape == (N, 1, H, W), eo.shape
    assert bool(jnp.all(jnp.isfinite(eo)))
    assert bool(jnp.all((eo >= 0.0) & (eo <= 1.0)))  # sigmoid output
    assert out["images_masked"].shape == (N, 3, H, W)
    assert out["edges_masked"].shape == (N, 1, H, W)
    print("KERNEL_OK")
</pallas_src>

<mosaic_0001>
module attributes {stable_mosaic.version = 11 : i64} {
  func.func @_gemm_multi_k_kernel(%arg0: i32, %arg1: i32, %arg2: i32, %arg3: memref<64x128xbf16, #tpu.memory_space<vmem>>, %arg4: memref<128x128xbf16, #tpu.memory_space<vmem>>, %arg5: memref<64x1xf32, #tpu.memory_space<vmem>>, %arg6: memref<64x128xf32, #tpu.memory_space<vmem>>, %arg7: memref<64x128xf32, #tpu.memory_space<vmem>>) attributes {dimension_semantics = [#tpu.dimension_semantics<parallel>, #tpu.dimension_semantics<parallel>, #tpu.dimension_semantics<arbitrary>], iteration_bounds = array<i64: 1, 2, 3>, scalar_prefetch = 0 : i64, scratch_operands = 1 : i64, tpu.core_type = #tpu.core_type<tc>, window_params = [{transform_indices = @transform_0, window_bounds = array<i64: 64, 128>}, {transform_indices = @transform_1, window_bounds = array<i64: 128, 128>}, {transform_indices = @transform_2, window_bounds = array<i64: 64, 1>}, {transform_indices = @transform_3, window_bounds = array<i64: 64, 128>}]} {
    %c0 = arith.constant 0 : index
    %c0_0 = arith.constant 0 : index
    %0 = vector.load %arg3[%c0, %c0_0] : memref<64x128xbf16, #tpu.memory_space<vmem>>, vector<64x128xbf16>
    %c0_1 = arith.constant 0 : index
    %c0_2 = arith.constant 0 : index
    %1 = vector.load %arg4[%c0_1, %c0_2] : memref<128x128xbf16, #tpu.memory_space<vmem>>, vector<128x128xbf16>
    %cst = arith.constant dense<0.000000e+00> : vector<64x128xf32>
    %2 = tpu.matmul %0, %1, %cst {dimension_numbers = #tpu.dot_dimension_numbers<[1], [0], [0], [1], [0, 0, 1, 1], [], []>} : vector<64x128xbf16>, vector<128x128xbf16>, vector<64x128xf32> -> vector<64x128xf32>
    %c0_i32 = arith.constant 0 : i32
    %3 = arith.cmpi eq, %arg2, %c0_i32 : i32
    %4 = arith.extui %3 : i1 to i32
    %c0_i32_3 = arith.constant 0 : i32
    %5 = arith.cmpi ne, %4, %c0_i32_3 : i32
    scf.if %5 {
      %c0_7 = arith.constant 0 : index
      %c0_8 = arith.constant 0 : index
      %12 = vector.load %arg7[%c0_7, %c0_8] : memref<64x128xf32, #tpu.memory_space<vmem>>, vector<64x128xf32>
      tpu.vector_store %arg7[%c0_7, %c0_8], %2 {strides = array<i32>} : memref<64x128xf32, #tpu.memory_space<vmem>>, vector<64x128xf32>,
    } else {
    }
    %c0_i32_4 = arith.constant 0 : i32
    %6 = arith.cmpi ne, %arg2, %c0_i32_4 : i32
    %7 = arith.extui %6 : i1 to i32
    %c0_i32_5 = arith.constant 0 : i32
    %8 = arith.cmpi ne, %7, %c0_i32_5 : i32
    scf.if %8 {
      %c0_7 = arith.constant 0 : index
      %c0_8 = arith.constant 0 : index
      %12 = vector.load %arg7[%c0_7, %c0_8] : memref<64x128xf32, #tpu.memory_space<vmem>>, vector<64x128xf32>
      %13 = arith.addf %12, %2 : vector<64x128xf32>
      %c0_9 = arith.constant 0 : index
      %c0_10 = arith.constant 0 : index
      %14 = vector.load %arg7[%c0_9, %c0_10] : memref<64x128xf32, #tpu.memory_space<vmem>>, vector<64x128xf32>
      tpu.vector_store %arg7[%c0_9, %c0_10], %13 {strides = array<i32>} : memref<64x128xf32, #tpu.memory_space<vmem>>, vector<64x128xf32>,
    } else {
    }
    %c2_i32 = arith.constant 2 : i32
    %9 = arith.cmpi eq, %arg2, %c2_i32 : i32
    %10 = arith.extui %9 : i1 to i32
    %c0_i32_6 = arith.constant 0 : i32
    %11 = arith.cmpi ne, %10, %c0_i32_6 : i32
    scf.if %11 {
      %c0_7 = arith.constant 0 : index
      %c0_8 = arith.constant 0 : index
      %12 = vector.load %arg7[%c0_7, %c0_8] : memref<64x128xf32, #tpu.memory_space<vmem>>, vector<64x128xf32>
      %c0_9 = arith.constant 0 : index
      %c0_10 = arith.constant 0 : index
      %13 = vector.load %arg5[%c0_9, %c0_10] : memref<64x1xf32, #tpu.memory_space<vmem>>, vector<64x1xf32>
      %14 = vector.broadcast %13 : vector<64x1xf32> to vector<64x128xf32>
      %15 = arith.addf %12, %14 : vector<64x128xf32>
      %c0_11 = arith.constant 0 : index
      %c0_12 = arith.constant 0 : index
      %16 = vector.load %arg6[%c0_11, %c0_12] : memref<64x128xf32, #tpu.memory_space<vmem>>, vector<64x128xf32>
      tpu.vector_store %arg6[%c0_11, %c0_12], %15 {strides = array<i32>} : memref<64x128xf32, #tpu.memory_space<vmem>>, vector<64x128xf32>,
    } else {
    }
    return
  }
  func.func @transform_0(%arg0: i32, %arg1: i32, %arg2: i32) -> (i32, i32) {
    %c0_i32 = arith.constant 0 : i32
    return %arg0, %arg2 : i32, i32
  }
  func.func @transform_1(%arg0: i32, %arg1: i32, %arg2: i32) -> (i32, i32) {
    %c0_i32 = arith.constant 0 : i32
    return %arg2, %arg1 : i32, i32
  }
  func.func @transform_2(%arg0: i32, %arg1: i32, %arg2: i32) -> (i32, i32) {
    %c0_i32 = arith.constant 0 : i32
    %c0_i32_0 = arith.constant 0 : i32
    return %arg0, %c0_i32 : i32, i32
  }
  func.func @transform_3(%arg0: i32, %arg1: i32, %arg2: i32) -> (i32, i32) {
    %c0_i32 = arith.constant 0 : i32
    return %arg0, %arg1 : i32, i32
  }
}

</mosaic_0001>

<bundles_post_ra>
// kernel: tpu_custom_call.1
= control target key start
LH: loop header
LB: loop body
LE: loop exit
PB: predicated region body
PF: predicated region fallthrough
CT: control target
= control target key end

     0   :  { %s1495_s0 = inlined_call_operand.hbm [shape: bf16[64,384], index: 0, kind: input, shape index: {}]   ;;  %s1496_s1 = inlined_call_operand.hbm [shape: bf16[384,256], index: 1, kind: input, shape index: {}]   ;;  %s1497_s2 = inlined_call_operand.vmem [shape: f32[64,1], index: 2, kind: input, shape index: {}]   ;;  %s1498_s3 = inlined_call_operand.hbm [shape: f32[64,256], index: 3, kind: output, shape index: {}]  }
   0x1   :  { %1508 = sst [smem:[#allocation20_spill]] %s1495_s0 }
   0x2   :  { %1509 = sst [smem:[#allocation21_spill]] %s1497_s2 }
   0x3   :  { %1510 = sst [smem:[#allocation22_spill]] %s1498_s3 }
   0x4   :  { %8 = vsyncpa [#allocation4], 0 }
   0x5   :  { %10 = vsyncpa [#allocation4 + $0x1], 0 }
   0x6   :  { %11 = vsyncpa [#allocation7], 0 }
   0x7   :  { %13 = vsyncpa [#allocation7 + $0x1], 0 }
   0x8   :  { %14 = vsyncpa [#allocation5], 0 }
   0x9   :  { %16 = vsyncpa [#allocation5 + $0x1], 0  ;;  %s1166_s12 = smov 0   ;;  %s1168_s13 = smov 0  }
   0xa   :  { %s1170_s14 = smov 0   ;;  %s1172_s15 = smov 0  }
   0xb   :  { %s1174_s16 = smov 0   ;;  %s1176_s17 = smov 0  }
   0xc   :  { %s1178_s18 = smov 0   ;;  %s1180_s19 = smov 0  }
   0xd   :  { %s1182_s20 = smov 0   ;;  %s1184_s21 = smov 0  }
   0xe   :  { %s1186_s22 = smov 0   ;;  %s1188_s23 = smov 0  }
   0xf   :  { %s1190_s24 = smov 0   ;;  %s1192_s25 = smov 0  }
  0x10 LB: > { %1511 = sst [smem:[#allocation12_spill]] %s1104_s17  ;;  %s677_s26 = sadd.s32 4294967295, %s1136_s25   ;;  %s1136_s25 = sphi %s1192_s25, %s22_s25   ;;  %s1132_s24 = sphi %s1190_s24, %s1554_s24   ;;  %s1128_s23 = sphi %s1188_s23, %s1553_s23   ;;  %s1124_s22 = sphi %s1186_s22, %s1552_s22   ;;  %s1120_s21 = sphi %s1184_s21, %s1551_s21   ;;  %s1116_s20 = sphi %s1182_s20, %s1541_s20   ;;  %s1112_s19 = sphi %s1180_s19, %s1550_s19   ;;  %s1108_s18 = sphi %s1178_s18, %s1549_s18   ;;  %s1104_s17 = sphi %s1176_s17, %s1539_s17   ;;  %s1100_s16 = sphi %s1174_s16, %s1548_s16   ;;  %s1096_s15 = sphi %s1172_s15, %s1547_s15   ;;  %s1092_s14 = sphi %s1170_s14, %s1546_s14   ;;  %s1088_s13 = sphi %s1168_s13, %s1545_s13   ;;  %s1084_s12 = sphi %s1166_s12, %s1544_s12  }
  0x11   : > { %1512 = sst [smem:[#allocation13_spill]] %s1116_s20  ;;  %s34_s27 = sadd.s32 1, %s1128_s23 }
  0x12   : > { %1513 = sst [smem:[#allocation14_spill]] %s1124_s22  ;;  %p1236_p0 = scmp.ge.s32.totalorder %s34_s27, 3 }
  0x13   : > { %s50_s29 = sadd.s32 1, %s1116_s20  ;;  %p57_p1 = scmp.ne.s32.totalorder %s1116_s20, %s1112_s19 }
  0x14   : > { %p58_p2 = scmp.eq.s32.totalorder %s1136_s25, 0  ;;  %s1556_s27 = smov (%p1236_p0, %s34_s27), 0 }
  0x15   : > { %1515 = sst [smem:[#allocation15_spill]] %s1556_s27  ;;  %p63_p4 = scmp.ne.s32.totalorder %s1112_s19, %s1108_s18 }
  0x16   : > { %p1250_p3 = por %p58_p2, %p57_p1  ;;  %s1257_s4 = ssub.s32 %s1128_s23, %s1556_s27 }
  0x17   : > { %p1259_p5 = scmp.eq.s32.totalorder %s677_s26, 0  ;;  %p48_p6 = scmp.eq.s32.totalorder %s1257_s4, 0 }
  0x18   : > { %p1264_p7 = scmp.eq.s32.totalorder %s677_s26, 5  ;;  %p1502_p9 = scmp.lt.s32.totalorder %s1136_s25, 6 }
  0x19   : > { %p1270_p8 = por %p1259_p5, %p63_p4  ;;  %s178_s9 = sand.u32 1, %s1116_s20  }
  0x1a   : > { %s1275_s8 = scalar_select %p48_p6, %s1116_s20, %s50_s29  }
  0x1b   : > { %s682_s10 = sshll.u32 %s178_s9, 5  ;;  %s683_s11 = sshll.u32 %s1128_s23, 2 }
  0x1c   : > { %1520 = sst [smem:[#allocation16_spill]] %s1275_s8  ;;  %s182_s3 = scalar_lea.vmem [#allocation3], %s682_s10 }
  0x1d   : > { %s1521_s0 = sld [smem:[#allocation20_spill]]  ;;  %s192_s22 = sshll.u32 %s182_s3, 4  ;;  %s193_s22 = int_to_ptr.vmem [resolvable:$true] %s192_s22 }
  0x1e   : > { %p791_p10 = pnand %p1502_p9, %p1250_p3  ;;  %s179_s27 = scalar_lea.sflag [#allocation4], %s178_s9 }
  0x1f   : > { %s1138_s29 = smov 192   ;;  %s1503_s10 = smov 64  }
  0x20   : > { %p688_p11 = scmp.ge.s32.totalorder %s1136_s25, 1  ;;  %p224_p12 = scmp.lt.s32.totalorder %s1136_s25, 7 }
  0x21   : > { %s678_s30 = sadd.s32 4294967294, %s1136_s25   ;;  %s37_s9 = sadd.s32 1, %s1132_s24 }
  0x22   : > { %p1291_p13 = pnand %p688_p11, %p224_p12  ;;  %s78_s18 = sadd.s32 1, %s1104_s17 }
  0x23   : > { %s189_s26 = scalar_lea.hbm %s1521_s0, %s683_s11  ;;  %s1504_s11 = smov 4  }
  0x24   : > { %s190_s2 = sshll.u32 %s189_s26, 4  ;;  %s1558_s9 = smov (!%p1236_p0, %s37_s9), %s1132_s24  ;;  %s191_s2 = int_to_ptr.hbm [resolvable:$true] %s190_s2 }
  0x25   : > { %793 = dma.hbm_to_vmem [thread:$0]  (!%p791_p10), %s191_s2, 512, %s193_s22, %s179_s27, %s1138_s29, %s1503_s10, %s1504_s11  }
  0x26   : > { %p85_p1 = scmp.ne.s32.totalorder %s1104_s17, %s1100_s16  ;;  %p91_p3 = scmp.ne.s32.totalorder %s1100_s16, %s1096_s15 }
  0x27   : > { %p39_p4 = scmp.ge.s32.totalorder %s1558_s9, 2  ;;  %s132_s2 = sadd.s32 1, %s1092_s14 }
  0x28   : > { %p1308_p6 = por %p85_p1, %p58_p2  ;;  %p1314_p10 = por %p91_p3, %p1259_p5 }
  0x29   : > { %s1560_s9 = smov (%p39_p4, %s1558_s9), 0  ;;  %p142_p0 = scmp.ne.s32.totalorder %s1092_s14, %s1088_s13 }
  0x2a   : > { %1525 = sst [smem:[#allocation17_spill]] %s1560_s9  ;;  %p148_p11 = scmp.ne.s32.totalorder %s1088_s13, %s1084_s12 }
  0x2b   : > { %s74_s15 = ssub.s32 %s1132_s24, %s1560_s9  ;;  %p149_p12 = scmp.eq.s32.totalorder %s678_s30, 5 }
  0x2c   : > { %s75_s28 = sor.u32 %s74_s15, %s1257_s4  ;;  %p130_p2 = scmp.eq.s32.totalorder %s74_s15, 0 }
  0x2d   : > { %p76_p1 = scmp.eq.s32.totalorder %s75_s28, 0  ;;  %p1329_p9 = por %p1264_p7, %p142_p0 }
  0x2e   : > { %s1334_s27 = scalar_select %p130_p2, %s1092_s14, %s132_s2  }
  0x2f   : > { %s1337_s29 = scalar_select %p76_p1, %s1104_s17, %s78_s18  }
  0x30   : > { %1527 = sst [smem:[#allocation18_spill]] %s1334_s27  ;;  %p1339_p5 = por %p149_p12, %p148_p11 }
  0x31   : > { %1528 = sst [smem:[#allocation19_spill]] %s1337_s29  ;;  %s202_s11 = sand.u32 1, %s1104_s17  }
  0x32   : > { %s684_s30 = sshll.u32 %s202_s11, 6  ;;  %s747_s4 = sshll.u32 %s1128_s23, 5 }
  0x33   : > { %s211_s0 = sadd.s32 %s1132_s24, %s747_s4  ;;  %s206_s9 = scalar_lea.vmem [#allocation6], %s684_s30 }
  0x34   : > { %s216_s15 = sshll.u32 %s206_s9, 4  ;;  %s687_s28 = sshll.u32 %s211_s0, 2  ;;  %s217_s15 = int_to_ptr.vmem [resolvable:$true] %s216_s15 }
  0x35   : > { %s213_s20 = scalar_lea.hbm %s1496_s1, %s687_s28  ;;  %p1530_p7 = scmp.lt.s32.totalorder %s1136_s25, 6 }
  0x36   : > { %s214_s18 = sshll.u32 %s213_s20, 4  ;;  %s203_s2 = scalar_lea.sflag [#allocation7], %s202_s11  ;;  %s215_s18 = int_to_ptr.hbm [resolvable:$true] %s214_s18 }
  0x37   : > { %p794_p3 = pnand %p1530_p7, %p1308_p6  ;;  %s1141_s29 = smov 128  }
  0x38   : > { %s1531_s27 = smov 4   ;;  %s1532_s17 = smov 64  }
  0x39   : > { %796 = dma.hbm_to_vmem [thread:$0]  (!%p794_p3), %s215_s18, 1024, %s217_s15, %s203_s2, %s1141_s29, %s1532_s17, %s1531_s27  }
  0x3a   : > { %228 = sbr.rel (%p1291_p13) target bundleno = 434 (0x1b2), region = 32  ;;  %s230_s0 = sand.u32 (!%p1291_p13), 1, %s1112_s19  }
  0x3b   : > { %s689_s9 = sshll.u32 (!%p1291_p13), %s230_s0, 5  ;;  %s231_s30 = scalar_lea.sflag (!%p1291_p13), [#allocation4], %s230_s0 }
  0x3c   : > { %s1358_s8 = scalar_lea.vmem (!%p1291_p13), [#allocation3], %s689_s9 }
  0x3f   : > { %1071 = dma.done.wait (%p1270_p8), %s231_s30, 512  }
  0x40   : > { %1073 = vsyncadd (%p1270_p8), %s231_s30, 4294966784  ;;  %s240_s20 = sand.u32 1, %s1100_s16  }
  0x41   : > { %s690_s11 = sshll.u32 %s240_s20, 6  ;;  %s241_s17 = scalar_lea.sflag [#allocation7], %s240_s20 }
  0x42   : > { %s1365_s22 = scalar_lea.vmem [#allocation6], %s690_s11 }
  0x43   : > { %1075 = dma.done.wait (%p1314_p10), %s241_s17, 1024  }
  0x44   : > { %1077 = vsyncadd (%p1314_p10), %s241_s17, 4294966272  ;;  %s275_s7 = sand.u32 1, %s1088_s13   ;;  %v759_v0 = vld [vmem:[%s1365_s22 + $0x38] sm:$0xff]  ;;  %v758_v1 = vld [vmem:[%s1365_s22 + $0x30] sm:$0xff]  ;;  %p740_p8 = scmp.ne.s32.totalorder %s1120_s21, 0 }
  0x45   : > { %s1374_s3 = sshll.u32 %s275_s7, 6  ;;  %383 = vmatpush.bf16.msra.mxu0 %v759_v0  ;;  %760 = vmatpush.bf16.msra.mxu1 %v759_v0  ;;  %v757_v2 = vld [vmem:[%s1365_s22 + $0x28] sm:$0xff]  ;;  %v756_v3 = vld [vmem:[%s1365_s22 + $0x20] sm:$0xff]  ;;  %v755_v4 = vld [vmem:[%s1365_s22 + $0x18] sm:$0xff] }
  0x46   : > { %761 = vmatpush.bf16.msra.mxu2 %v759_v0  ;;  %762 = vmatpush.bf16.msra.mxu3 %v759_v0  ;;  %v754_v5 = vld [vmem:[%s1365_s22 + $0x10] sm:$0xff]  ;;  %v753_v6 = vld [vmem:[%s1365_s22 + $0x8] sm:$0xff]  ;;  %v752_v7 = vld [vmem:[%s1365_s22] sm:$0xff]  ;;  %s1389_s26 = scalar_lea.vmem [#allocation8], %s1374_s3 }
  0x47   : > { %v748_v8 = vld [vmem:[%s1358_s8] sm:$0xff]  ;;  %v749_v9 = vld [vmem:[%s1358_s8 + $0x8] sm:$0xff]  ;;  %v750_v10 = vld [vmem:[%s1358_s8 + $0x10] sm:$0xff] }
  0x48   : > { %v751_v11 = vld [vmem:[%s1358_s8 + $0x18] sm:$0xff] }
  0x49   : > { %384 = vmatpush.bf16.msra.mxu0 %v758_v1  ;;  %763 = vmatpush.bf16.msra.mxu1 %v758_v1 }
  0x4a   : > { %764 = vmatpush.bf16.msra.mxu2 %v758_v1  ;;  %765 = vmatpush.bf16.msra.mxu3 %v758_v1 }
  0x4d   : > { %385 = vmatpush.bf16.msra.mxu0 %v757_v2  ;;  %766 = vmatpush.bf16.msra.mxu1 %v757_v2 }
  0x4e   : > { %767 = vmatpush.bf16.msra.mxu2 %v757_v2  ;;  %768 = vmatpush.bf16.msra.mxu3 %v757_v2 }
  0x51   : > { %386 = vmatpush.bf16.msra.mxu0 %v756_v3  ;;  %769 = vmatpush.bf16.msra.mxu1 %v756_v3 }
  0x52   : > { %770 = vmatpush.bf16.msra.mxu2 %v756_v3  ;;  %771 = vmatpush.bf16.msra.mxu3 %v756_v3 }
  0x55   : > { %387 = vmatpush.bf16.msra.mxu0 %v755_v4  ;;  %772 = vmatpush.bf16.msra.mxu1 %v755_v4 }
  0x56   : > { %773 = vmatpush.bf16.msra.mxu2 %v755_v4  ;;  %774 = vmatpush.bf16.msra.mxu3 %v755_v4 }
  0x59   : > { %388 = vmatpush.bf16.msra.mxu0 %v754_v5  ;;  %775 = vmatpush.bf16.msra.mxu1 %v754_v5 }
  0x5a   : > { %776 = vmatpush.bf16.msra.mxu2 %v754_v5  ;;  %777 = vmatpush.bf16.msra.mxu3 %v754_v5 }
  0x5d   : > { %389 = vmatpush.bf16.msra.mxu0 %v753_v6  ;;  %778 = vmatpush.bf16.msra.mxu1 %v753_v6 }
  0x5e   : > { %779 = vmatpush.bf16.msra.mxu2 %v753_v6  ;;  %780 = vmatpush.bf16.msra.mxu3 %v753_v6 }
  0x61   : > { %390 = vmatpush.bf16.msra.mxu0 %v752_v7  ;;  %781 = vmatpush.bf16.msra.mxu1 %v752_v7 }
  0x62   : > { %782 = vmatpush.bf16.msra.mxu2 %v752_v7  ;;  %783 = vmatpush.bf16.msra.mxu3 %v752_v7 }
  0x64   : > { %391 = vmatmul.bf16.vlgmr.msra.gmra.mxu0 %v748_v8  ;;  %396 = vmatmul.bf16.vlgmr.msra.gmra.mxu1 %v749_v9 }
  0x65   : > { %401 = vmatmul.bf16.vlgmr.msra.gmra.mxu2 %v750_v10  ;;  %406 = vmatmul.bf16.vlgmr.msra.gmra.mxu3 %v751_v11 }
  0xe1   : > { %v392_v12 = vpop.f32.mrf.mxu0  ;;  %v397_v13 = vpop.f32.mrf.mxu1 }
  0xe8   : > { %v402_v14 = vpop.f32.mrf.mxu2  ;;  %v407_v15 = vpop.f32.mrf.mxu3 }
  0xe9   : > { %v394_v16 = vpop.f32.mrf.mxu0  ;;  %v399_v17 = vpop.f32.mrf.mxu1 }
  0xec   : > { %415 = sbr.rel (%p740_p8) target bundleno = 249 (0xf9), region = 44 }
  0xf0   : > { %v404_v18 = vpop.f32.mrf.mxu2  ;;  %v409_v19 = vpop.f32.mrf.mxu3 }
  0xf1   : > { %416 = vst [vmem:[#allocation2 + $0x30] sm:$0xff] %v392_v12 }
  0xf2   : > { %417 = vst [vmem:[#allocation2] sm:$0xff] %v394_v16 }
  0xf3   : > { %418 = vst [vmem:[#allocation2 + $0x18] sm:$0xff] %v397_v13 }
  0xf4   : > { %419 = vst [vmem:[#allocation2 + $0x10] sm:$0xff] %v399_v17 }
  0xf5   : > { %420 = vst [vmem:[#allocation2 + $0x8] sm:$0xff] %v402_v14 }
  0xf6   : > { %421 = vst [vmem:[#allocation2 + $0x20] sm:$0xff] %v404_v18 }
  0xf7   : > { %422 = vst [vmem:[#allocation2 + $0x28] sm:$0xff] %v407_v15 }
  0xf8   : > { %423 = vst [vmem:[#allocation2 + $0x38] sm:$0xff] %v409_v19 }
  0xf9 PF: > { %p741_p13 = scmp.eq.s32.totalorder %s1120_s21, 0 }
  0xfb   : > { %427 = sbr.rel (%p741_p13) target bundleno = 267 (0x10b), region = 48 }
 0x100   : > { %v428_v20 = vld [vmem:[#allocation2 + $0x30] sm:$0xff]  ;;  %v429_v21 = vld [vmem:[#allocation2] sm:$0xff]  ;;  %v430_v22 = vld [vmem:[#allocation2 + $0x18] sm:$0xff] }
 0x101   : > { %v436_v23 = vadd.f32 %v428_v20, %v392_v12  ;;  %v437_v24 = vadd.f32 %v429_v21, %v394_v16  ;;  %v438_v25 = vadd.f32 %v430_v22, %v397_v13  ;;  %v431_v26 = vld [vmem:[#allocation2 + $0x10] sm:$0xff]  ;;  %v432_v27 = vld [vmem:[#allocation2 + $0x8] sm:$0xff]  ;;  %v433_v28 = vld [vmem:[#allocation2 + $0x20] sm:$0xff] }
 0x102   : > { %v439_v29 = vadd.f32 %v431_v26, %v399_v17  ;;  %v434_v30 = vld [vmem:[#allocation2 + $0x28] sm:$0xff]  ;;  %v440_v31 = vadd.f32 %v432_v27, %v402_v14  ;;  %v435_v32 = vld [vmem:[#allocation2 + $0x38] sm:$0xff]  ;;  %v441_v33 = vadd.f32 %v433_v28, %v404_v18 }
 0x103   : > { %444 = vst [vmem:[#allocation2 + $0x30] sm:$0xff] %v436_v23  ;;  %v442_v34 = vadd.f32 %v434_v30, %v407_v15  ;;  %v443_v35 = vadd.f32 %v435_v32, %v409_v19 }
 0x104   : > { %445 = vst [vmem:[#allocation2] sm:$0xff] %v437_v24 }
 0x105   : > { %446 = vst [vmem:[#allocation2 + $0x18] sm:$0xff] %v438_v25 }
 0x106   : > { %447 = vst [vmem:[#allocation2 + $0x10] sm:$0xff] %v439_v29 }
 0x107   : > { %448 = vst [vmem:[#allocation2 + $0x8] sm:$0xff] %v440_v31 }
 0x108   : > { %449 = vst [vmem:[#allocation2 + $0x20] sm:$0xff] %v441_v33 }
 0x109   : > { %450 = vst [vmem:[#allocation2 + $0x28] sm:$0xff] %v442_v34 }
 0x10a   : > { %451 = vst [vmem:[#allocation2 + $0x38] sm:$0xff] %v443_v35 }
 0x10b PF: > { %p742_p4 = scmp.ne.s32.totalorder %s1120_s21, 2 }
 0x10c   : > { %s1533_s4 = sld [smem:[#allocation21_spill]] (!%p742_p4) }
 0x10d   : > { %455 = sbr.rel (%p742_p4) target bundleno = 411 (0x19b), region = 52 }
 0x112   : > { %v466_v36 = vld [vmem:[%s1533_s4 + $0x10] sm:$0xff]  ;;  %v464_v37 = vld [vmem:[%s1533_s4] sm:$0xff]  ;;  %v1142_v38 = vmov 0   ;;  %v467_v40 = vld [vmem:[%s1533_s4 + $0x18] sm:$0xff] }
 0x113   : > { %924 = vset.pattern.permute.xlu1 %v1142_v38  ;;  %923 = vset.pattern.permute.xlu0 %v1142_v38  ;;  %v468_v39 = vld [vmem:[%s1533_s4 + $0x20] sm:$0xff]  ;;  %v465_v41 = vld [vmem:[%s1533_s4 + $0x8] sm:$0xff]  ;;  %v471_v43 = vld [vmem:[%s1533_s4 + $0x38] sm:$0xff] }
 0x114   : > { %484 = vperm.xlu1 %924, %v466_v36   ;;  %474 = vperm.xlu0 %923, %v464_v37   ;;  %v469_v42 = vld [vmem:[%s1533_s4 + $0x28] sm:$0xff]  ;;  %v470_v44 = vld [vmem:[%s1533_s4 + $0x30] sm:$0xff]  ;;  %v461_v48 = vld [vmem:[#allocation2 + $0x20] sm:$0xff] }
 0x115   : > { %925 = vset.pattern.permute.xlu2 %v1142_v38  ;;  %v460_v45 = vld [vmem:[#allocation2 + $0x8] sm:$0xff]  ;;  %v458_v51 = vld [vmem:[#allocation2 + $0x18] sm:$0xff]  ;;  %v456_v52 = vld [vmem:[#allocation2 + $0x30] sm:$0xff] }
 0x116   : > { %494 = vperm.xlu2 %925, %v468_v39   ;;  %v459_v57 = vld [vmem:[#allocation2 + $0x10] sm:$0xff]  ;;  %v457_v58 = vld [vmem:[#allocation2] sm:$0xff]  ;;  %v463_v63 = vld [vmem:[#allocation2 + $0x38] sm:$0xff] }
 0x117   : > { %v462_v0 = vld [vmem:[#allocation2 + $0x28] sm:$0xff] }
 0x11c   : > { %489 = vperm.xlu1 %924, %v467_v40   ;;  %479 = vperm.xlu0 %923, %v465_v41  }
 0x11e   : > { %499 = vperm.xlu2 %925, %v469_v42  }
 0x124   : > { %509 = vperm.xlu1 %924, %v471_v43   ;;  %504 = vperm.xlu0 %923, %v470_v44  }
 0x170   : > { %v495_v46 = vpop.permute.xlu2 %494 }
 0x171   : > { %v516_v47 = vadd.f32 %v495_v46, %v460_v45 }
 0x173   : > { %524 = vst [vmem:[%s1389_s26 + $0x20] sm:$0xff] %v516_v47 }
 0x178   : > { %v500_v49 = vpop.permute.xlu2 %499 }
 0x179   : > { %v517_v50 = vadd.f32 %v500_v49, %v461_v48 }
 0x17b   : > { %525 = vst [vmem:[%s1389_s26 + $0x28] sm:$0xff] %v517_v50 }
 0x186   : > { %v485_v53 = vpop.permute.xlu1 %484  ;;  %v475_v54 = vpop.permute.xlu0 %474 }
 0x187   : > { %v514_v55 = vadd.f32 %v485_v53, %v458_v51  ;;  %v512_v56 = vadd.f32 %v475_v54, %v456_v52 }
 0x189   : > { %522 = vst [vmem:[%s1389_s26 + $0x10] sm:$0xff] %v514_v55 }
 0x18a   : > { %520 = vst [vmem:[%s1389_s26] sm:$0xff] %v512_v56 }
 0x18e   : > { %v490_v59 = vpop.permute.xlu1 %489  ;;  %v480_v60 = vpop.permute.xlu0 %479 }
 0x18f   : > { %v515_v61 = vadd.f32 %v490_v59, %v459_v57  ;;  %v513_v62 = vadd.f32 %v480_v60, %v457_v58 }
 0x191   : > { %523 = vst [vmem:[%s1389_s26 + $0x18] sm:$0xff] %v515_v61 }
 0x192   : > { %521 = vst [vmem:[%s1389_s26 + $0x8] sm:$0xff] %v513_v62 }
 0x196   : > { %v510_v1 = vpop.permute.xlu1 %509  ;;  %v505_v2 = vpop.permute.xlu0 %504 }
 0x197   : > { %v519_v3 = vadd.f32 %v510_v1, %v463_v63  ;;  %v518_v4 = vadd.f32 %v505_v2, %v462_v0 }
 0x199   : > { %527 = vst [vmem:[%s1389_s26 + $0x38] sm:$0xff] %v519_v3 }
 0x19a   : > { %526 = vst [vmem:[%s1389_s26 + $0x30] sm:$0xff] %v518_v4 }
 0x19b PF: > { %s1534_s3 = sld [smem:[#allocation14_spill]]  ;;  %s543_s18 = sshll.u32 %s1389_s26, 4  ;;  %s544_s18 = int_to_ptr.vmem [resolvable:$true] %s543_s18 }
 0x19c   : > { %s1535_s28 = sld [smem:[#allocation22_spill]]  ;;  %s529_s2 = scalar_lea.sflag [#allocation5], %s275_s7 }
 0x1a1   : > { %s744_s27 = sshll.u32 %s1534_s3, 3 }
 0x1a2   : > { %s542_s6 = scalar_lea.hbm %s1535_s28, %s744_s27  ;;  %s1006_s20 = scalar_lea.hbm %s1535_s28, 128 }
 0x1a3   : > { %s545_s21 = sshll.u32 %s542_s6, 4  ;;  %s546_s21 = int_to_ptr.hbm [resolvable:$true] %s545_s21 }
 0x1a4   : > { %s1000_s0 = sshra.s32 %s546_s21, 4  ;;  %s1001_s0 = int_to_ptr.hbm [resolvable:$true] %s1000_s0 }
 0x1a5   : > { %s1002_s9 = scalar_lea.hbm %s1001_s0, 64  ;;  %p1007_p11 = scmp.lt.s32.totalorder %s1001_s0, %s1535_s28 }
 0x1a6   : > { %p1003_p6 = scmp.ne.s32.totalorder %s1001_s0, %s1002_s9  ;;  %p1008_p12 = scmp.lt.s32.totalorder %s1006_s20, %s1002_s9 }
 0x1a8   : > { %p1004_p10 = pnand %p1003_p6, %p1329_p9  ;;  %p1009_p2 = por %p1008_p12, %p1007_p11 }
 0x1aa   : > { %p1005_p0 = pneg %p1004_p10 }
 0x1ac   : > { %p1010_p1 = pnand %p1009_p2, %p1005_p0 }
 0x1ae   : > { %1013 = shalt.err (!%p1010_p1)
}
 0x1af   : > { %s1143_s7 = smov 128   ;;  %s1144_s26 = smov 256  }
 0x1b0   : > { %s1145_s22 = smov 8  }
 0x1b1   : > { %788 = dma.vmem_to_hbm [thread:$0]  (%p1329_p9), %s544_s18, 1024, %s546_s21, %s529_s2, %s1143_s7, %s1144_s26, %s1145_s22  }
 0x1b2 PF: > { %p802_p7 = scmp.ge.s32.totalorder %s1136_s25, 2  ;;  %s560_s3 = sand.u32 1, %s1084_s12  }
 0x1b3   : > { %s561_s27 = scalar_lea.sflag [#allocation5], %s560_s3 }
 0x1b4   : > { %p798_p3 = pnand %p802_p7, %p1339_p5 }
 0x1b6   : > { %p799_p8 = pneg %p798_p3 }
 0x1b8   : > { %1079 = dma.done.wait (%p799_p8), %s561_s27, 1024  }
 0x1b9   : > { %1081 = vsyncadd (%p799_p8), %s561_s27, 4294966272  ;;  %s22_s25 = sadd.s32 1, %s1136_s25   ;;  %s1537_s5 = sld [smem:[#allocation18_spill]] }
 0x1ba   : > { %p1448_p13 = scmp.ge.s32.totalorder %s22_s25, 8   ;;  %s1538_s6 = sld [smem:[#allocation12_spill]] }
 0x1bb   : > { %s1539_s17 = sld [smem:[#allocation19_spill]]  ;;  %s1544_s12 = smov %s1088_s13 }
 0x1bc   : > { %s1540_s21 = sld [smem:[#allocation13_spill]]  ;;  %s1545_s13 = smov %s1092_s14 }
 0x1bd   : > { %s1541_s20 = sld [smem:[#allocation16_spill]]  ;;  %s1547_s15 = smov %s1100_s16 }
 0x1be   : > { %s1542_s10 = sld [smem:[#allocation15_spill]]  ;;  %s1549_s18 = smov %s1112_s19 }
 0x1bf   : > { %s1543_s2 = sld [smem:[#allocation17_spill]]  ;;  %s1546_s14 = smov %s1537_s5 }
 0x1c0   : > { %s1548_s16 = smov %s1538_s6  ;;  %s1552_s22 = smov %s1132_s24 }
 0x1c1   :  { %21 = sbr.rel (!%p1448_p13) target bundleno = 16 (0x10), region = 105 }
 0x1c2   : > { %s1550_s19 = smov %s1540_s21  ;;  %s1551_s21 = smov %s1128_s23 }
 0x1c4   : > { %s1553_s23 = smov %s1542_s10 }
 0x1c5   : > { %s1554_s24 = smov %s1543_s2 }
 0x1c6   :  { %567 = vsyncpa [#allocation4], 1 }
 0x1c7   :  { %569 = vsyncpa [#allocation4 + $0x1], 1 }
 0x1c8   :  { %570 = vsyncpa [#allocation7], 1 }
 0x1c9   :  { %572 = vsyncpa [#allocation7 + $0x1], 1 }
 0x1ca   :  { %573 = vsyncpa [#allocation5], 1 }
 0x1cb   :  { %575 = vsyncpa [#allocation5 + $0x1], 1 }

</bundles_post_ra>
